<compile_context>
chip_gen: v7x
topology: tpu7x:2x2x1
jax: 0.10.0
libtpu: 0.0.40
codegen_flags: <defaults>
</compile_context>

<pallas_src>
import math

import jax
import jax.numpy as jnp
from jax.experimental import pallas as pl
from jax.experimental.pallas import tpu as pltpu

LANE = 128
SUBLANE = 8


def _round_up(x, m):
    return ((x + m - 1) // m) * m


def _cdiv(a, b):
    return (a + b - 1) // b


# ----------------------------- fused Pallas kernel ---------------------------


def _vae_fused_kernel(
    x_ref,                        # (tm, pack_w)  packed [coords | eps | 0] tile
    enc_w_ref, enc_b_ref,         # (pack_w, hid_p), (1, hid_p)
    mulv_w_ref, mulv_b_ref,       # (hid_p, 2*pack_w), (1, 2*pack_w)
    dec1_w_ref, dec1_b_ref,       # (pack_w, hid_p), (1, hid_p)
    dec2_w_ref, dec2_b_ref,       # (hid_p, pack_w), (1, pack_w)
    out_ref,                      # (tm, pack_w)  packed [recon | mu | logvar | 0]
):
    """Whole VAE forward for one batch tile; everything stays in VMEM/vregs."""
    pack_w = x_ref.shape[-1]
    x = x_ref[...]

    # Encoder.  eps lanes of x hit all-zero weight rows -> contribute nothing.
    h = jnp.dot(x, enc_w_ref[...], preferred_element_type=jnp.float32)
    h = jnp.maximum(h + enc_b_ref[...], 0.0)

    # Merged mu|logvar matmul: one 2*pack_w-wide MXU pass.
    #   first half : mu at its packed-output lanes, logvar at its packed-output
    #                lanes (i.e. already output-ready)
    #   second half: a second copy of logvar, aligned with the eps lanes of x.
    mulv = jnp.dot(h, mulv_w_ref[...], preferred_element_type=jnp.float32) + mulv_b_ref[...]
    mu_lv = mulv[:, :pack_w]     # output-ready mu|logvar (128-lane-aligned slice)
    lv_al = mulv[:, pack_w:]     # logvar aligned with eps lanes; 0 elsewhere

    # Reparameterization.  Only the latent lanes are meaningful; every other
    # lane of z is finite garbage (coords or stray logvar) that the zero rows
    # of dec1_w annihilate below.  exp() hits the EUP slot.
    z = mu_lv + jnp.exp(0.5 * lv_al) * x

    # Decoder.
    dh = jnp.dot(z, dec1_w_ref[...], preferred_element_type=jnp.float32)
    dh = jnp.maximum(dh + dec1_b_ref[...], 0.0)
    recon = jnp.dot(dh, dec2_w_ref[...], preferred_element_type=jnp.float32) + dec2_b_ref[...]

    # recon occupies lanes [0:in_dim], mu_lv occupies [in_dim:in_dim+2*latent];
    # the two are disjoint, so a single add packs the output slab.
    out_ref[...] = (recon + mu_lv).astype(out_ref.dtype)


# ------------------------------- parameters ---------------------------------


def init_vae_params(key, in_dim, hidden_dim, latent_dim, dtype=jnp.float32):
    """Unpadded parameters; weights stored as (in_features, out_features)."""
    ks = jax.random.split(key, 10)

    def lin(kw, kb, fan_in, fan_out):
        bound = 1.0 / math.sqrt(fan_in)
        w = jax.random.uniform(kw, (fan_in, fan_out), dtype, -bound, bound)
        b = jax.random.uniform(kb, (fan_out,), dtype, -bound, bound)
        return w, b

    p = {}
    p["enc_w"], p["enc_b"] = lin(ks[0], ks[1], in_dim, hidden_dim)
    p["mu_w"], p["mu_b"] = lin(ks[2], ks[3], hidden_dim, latent_dim)
    p["lv_w"], p["lv_b"] = lin(ks[4], ks[5], hidden_dim, latent_dim)
    p["dec1_w"], p["dec1_b"] = lin(ks[6], ks[7], latent_dim, hidden_dim)
    p["dec2_w"], p["dec2_b"] = lin(ks[8], ks[9], hidden_dim, in_dim)
    return p


def pack_vae_params(params, dtype=jnp.float32):
    """One-time packing of weights into the lane-dense slab layout.

    Packed slab layout (pack_w = round_up(in_dim + 2*latent_dim, 128)):
      input  lanes: [0:in)            coords
                    [in:in+lat)       eps
      output lanes: [0:in)            recon
                    [in:in+lat)       mu         (same lanes as eps -> aligned)
                    [in+lat:in+2lat)  logvar
    Padded rows/cols are exactly zero, so they contribute nothing downstream.
    """
    in_dim, hidden_dim = params["enc_w"].shape
    latent_dim = params["mu_w"].shape[1]
    pack_w = _round_up(in_dim + 2 * latent_dim, LANE)
    hid_p = _round_up(hidden_dim, LANE)
    c0, m0, l0 = 0, in_dim, in_dim + latent_dim

    def zeros(shape):
        return jnp.zeros(shape, dtype)

    enc_w = zeros((pack_w, hid_p)).at[c0:c0 + in_dim, :hidden_dim].set(params["enc_w"])
    enc_b = zeros((1, hid_p)).at[0, :hidden_dim].set(params["enc_b"])

    mulv_w = zeros((hid_p, 2 * pack_w))
    mulv_w = mulv_w.at[:hidden_dim, m0:m0 + latent_dim].set(params["mu_w"])
    mulv_w = mulv_w.at[:hidden_dim, l0:l0 + latent_dim].set(params["lv_w"])
    mulv_w = mulv_w.at[:hidden_dim, pack_w + m0:pack_w + m0 + latent_dim].set(params["lv_w"])
    mulv_b = zeros((1, 2 * pack_w))
    mulv_b = mulv_b.at[0, m0:m0 + latent_dim].set(params["mu_b"])
    mulv_b = mulv_b.at[0, l0:l0 + latent_dim].set(params["lv_b"])
    mulv_b = mulv_b.at[0, pack_w + m0:pack_w + m0 + latent_dim].set(params["lv_b"])

    dec1_w = zeros((pack_w, hid_p)).at[m0:m0 + latent_dim, :hidden_dim].set(params["dec1_w"])
    dec1_b = zeros((1, hid_p)).at[0, :hidden_dim].set(params["dec1_b"])
    dec2_w = zeros((hid_p, pack_w)).at[:hidden_dim, c0:c0 + in_dim].set(params["dec2_w"])
    dec2_b = zeros((1, pack_w)).at[0, c0:c0 + in_dim].set(params["dec2_b"])

    return {"enc_w": enc_w, "enc_b": enc_b,
            "mulv_w": mulv_w, "mulv_b": mulv_b,
            "dec1_w": dec1_w, "dec1_b": dec1_b,
            "dec2_w": dec2_w, "dec2_b": dec2_b}


# ------------------------------- VAE forward ---------------------------------


def model_forward(packed_params, coords, eps, *, block_m=1024):
    """Equivalent of Model.forward for which_model == 'vae'.

    Single fused pallas_call, batch tiled over the grid, weights VMEM-resident.
    Returns (recon, coords, mu, logvar) with the original (unpadded) shapes.
    All sizes are derived from static shapes (jit-safe).
    """
    p = packed_params
    B, in_dim = coords.shape
    latent_dim = eps.shape[1]
    pack_w = p["dec2_w"].shape[1]

    # Batch tiling: at least 2 tiles so v7x's two TensorCores both get work;
    # tile size chosen so padded rows are minimal (< 8 wasted rows per tile).
    n_tiles = max(2, _cdiv(B, block_m))
    tm = _round_up(_cdiv(B, n_tiles), SUBLANE)
    b_pad = tm * n_tiles

    # Single packed, lane-dense input slab: [coords | eps | 0].
    # TODO(synk): in a real training loop, emit this layout directly from the
    # data pipeline so the pack never round-trips HBM in the hot path.
    x = jnp.zeros((b_pad, pack_w), coords.dtype)
    x = x.at[:B, :in_dim].set(coords)
    x = x.at[:B, in_dim:in_dim + latent_dim].set(eps)

    def tile_spec(width):
        return pl.BlockSpec((tm, width), lambda i: (i, 0))

    def resident(arr):
        # same block every grid step -> fetched from HBM once, stays in VMEM
        return pl.BlockSpec(arr.shape, lambda i: (0, 0))

    out = pl.pallas_call(
        _vae_fused_kernel,
        out_shape=jax.ShapeDtypeStruct((b_pad, pack_w), coords.dtype),
        grid=(n_tiles,),
        in_specs=[
            tile_spec(pack_w),            # packed coords|eps tile
            resident(p["enc_w"]), resident(p["enc_b"]),
            resident(p["mulv_w"]), resident(p["mulv_b"]),
            resident(p["dec1_w"]), resident(p["dec1_b"]),
            resident(p["dec2_w"]), resident(p["dec2_b"]),
        ],
        out_specs=tile_spec(pack_w),      # packed recon|mu|logvar tile
        compiler_params=pltpu.CompilerParams(
            dimension_semantics=("parallel",),   # shard batch tiles across TCs
        ),
    )(x, p["enc_w"], p["enc_b"], p["mulv_w"], p["mulv_b"],
      p["dec1_w"], p["dec1_b"], p["dec2_w"], p["dec2_b"])

    recon = out[:B, :in_dim]
    mu = out[:B, in_dim:in_dim + latent_dim]
    logvar = out[:B, in_dim + latent_dim:in_dim + 2 * latent_dim]
    return recon, coords, mu, logvar


# ----------------------------------- main ------------------------------------


if __name__ == "__main__":
    key = jax.random.PRNGKey(0)
    k_p, k_x, k_eps = jax.random.split(key, 3)

    batch = 16
    in_dim = 48        # e.g. 16 atoms * 3 coordinates, flattened MD coords
    hidden_dim = 32
    latent_dim = 8

    coords = jax.random.normal(k_x, (batch, in_dim), dtype=jnp.float32)
    eps = jax.random.normal(k_eps, (batch, latent_dim), dtype=jnp.float32)

    raw_params = init_vae_params(k_p, in_dim, hidden_dim, latent_dim)
    packed_params = pack_vae_params(raw_params)

    fwd = jax.jit(model_forward)
    recon, x_out, mu, logvar = fwd(packed_params, coords, eps)
    jax.block_until_ready((recon, x_out, mu, logvar))

    # shape checks against the reference semantics
    assert recon.shape == (batch, in_dim)
    assert x_out.shape == (batch, in_dim)
    assert mu.shape == (batch, latent_dim)
    assert logvar.shape == (batch, latent_dim)

    # numerical reference in plain JAX on the unpadded parameters
    def ref_dense(xx, w, b, relu=False):
        y = xx @ w + b
        return jnp.maximum(y, 0.0) if relu else y

    h_r = ref_dense(coords, raw_params["enc_w"], raw_params["enc_b"], relu=True)
    mu_r = ref_dense(h_r, raw_params["mu_w"], raw_params["mu_b"])
    lv_r = ref_dense(h_r, raw_params["lv_w"], raw_params["lv_b"])
    z_r = mu_r + jnp.exp(0.5 * lv_r) * eps
    dh_r = ref_dense(z_r, raw_params["dec1_w"], raw_params["dec1_b"], relu=True)
    recon_r = ref_dense(dh_r, raw_params["dec2_w"], raw_params["dec2_b"])

    # Tolerance accommodates MXU default-precision matmuls vs the XLA reference;
    # any packing/layout bug would produce O(0.1-1) errors and still be caught.
    tol = dict(atol=2e-2, rtol=2e-2)
    assert jnp.allclose(mu, mu_r, **tol)
    assert jnp.allclose(logvar, lv_r, **tol)
    assert jnp.allclose(recon, recon_r, **tol)
    assert jnp.allclose(x_out, coords)

    print("KERNEL_OK")
</pallas_src>

<mosaic_0001>
module attributes {stable_mosaic.version = 11 : i64} {
  func.func @_vae_fused_kernel(%arg0: i32, %arg1: memref<8x128xf32, #tpu.memory_space<vmem>>, %arg2: memref<128x128xf32, #tpu.memory_space<vmem>>, %arg3: memref<1x128xf32, #tpu.memory_space<vmem>>, %arg4: memref<128x256xf32, #tpu.memory_space<vmem>>, %arg5: memref<1x256xf32, #tpu.memory_space<vmem>>, %arg6: memref<128x128xf32, #tpu.memory_space<vmem>>, %arg7: memref<1x128xf32, #tpu.memory_space<vmem>>, %arg8: memref<128x128xf32, #tpu.memory_space<vmem>>, %arg9: memref<1x128xf32, #tpu.memory_space<vmem>>, %arg10: memref<8x128xf32, #tpu.memory_space<vmem>>) attributes {dimension_semantics = [#tpu.dimension_semantics<parallel>], iteration_bounds = array<i64: 2>, scalar_prefetch = 0 : i64, scratch_operands = 0 : i64, tpu.core_type = #tpu.core_type<tc>, window_params = [{transform_indices = @transform_0, window_bounds = array<i64: 8, 128>}, {pipeline_mode = #tpu.pipeline_mode<synchronous>, transform_indices = @transform_1, window_bounds = array<i64: 128, 128>}, {pipeline_mode = #tpu.pipeline_mode<synchronous>, transform_indices = @transform_2, window_bounds = array<i64: 1, 128>}, {pipeline_mode = #tpu.pipeline_mode<synchronous>, transform_indices = @transform_3, window_bounds = array<i64: 128, 256>}, {pipeline_mode = #tpu.pipeline_mode<synchronous>, transform_indices = @transform_4, window_bounds = array<i64: 1, 256>}, {pipeline_mode = #tpu.pipeline_mode<synchronous>, transform_indices = @transform_5, window_bounds = array<i64: 128, 128>}, {pipeline_mode = #tpu.pipeline_mode<synchronous>, transform_indices = @transform_6, window_bounds = array<i64: 1, 128>}, {pipeline_mode = #tpu.pipeline_mode<synchronous>, transform_indices = @transform_7, window_bounds = array<i64: 128, 128>}, {pipeline_mode = #tpu.pipeline_mode<synchronous>, transform_indices = @transform_8, window_bounds = array<i64: 1, 128>}, {transform_indices = @transform_9, window_bounds = array<i64: 8, 128>}]} {
    %c0 = arith.constant 0 : index
    %c0_0 = arith.constant 0 : index
    %0 = vector.load %arg1[%c0, %c0_0] : memref<8x128xf32, #tpu.memory_space<vmem>>, vector<8x128xf32>
    %c0_1 = arith.constant 0 : index
    %c0_2 = arith.constant 0 : index
    %1 = vector.load %arg2[%c0_1, %c0_2] : memref<128x128xf32, #tpu.memory_space<vmem>>, vector<128x128xf32>
    %cst = arith.constant dense<0.000000e+00> : vector<8x128xf32>
    %2 = tpu.matmul %0, %1, %cst {dimension_numbers = #tpu.dot_dimension_numbers<[1], [0], [0], [1], [0, 0, 1, 1], [], []>} : vector<8x128xf32>, vector<128x128xf32>, vector<8x128xf32> -> vector<8x128xf32>
    %c0_3 = arith.constant 0 : index
    %c0_4 = arith.constant 0 : index
    %3 = vector.load %arg3[%c0_3, %c0_4] : memref<1x128xf32, #tpu.memory_space<vmem>>, vector<1x128xf32>
    %4 = vector.broadcast %3 : vector<1x128xf32> to vector<8x128xf32>
    %5 = arith.addf %2, %4 : vector<8x128xf32>
    %cst_5 = arith.constant 0.000000e+00 : f32
    %6 = vector.broadcast %cst_5 : f32 to vector<8x128xf32>
    %7 = arith.maximumf %5, %6 : vector<8x128xf32>
    %c0_6 = arith.constant 0 : index
    %c0_7 = arith.constant 0 : index
    %8 = vector.load %arg4[%c0_6, %c0_7] : memref<128x256xf32, #tpu.memory_space<vmem>>, vector<128x256xf32>
    %cst_8 = arith.constant dense<0.000000e+00> : vector<8x256xf32>
    %9 = tpu.matmul %7, %8, %cst_8 {dimension_numbers = #tpu.dot_dimension_numbers<[1], [0], [0], [1], [0, 0, 1, 1], [], []>} : vector<8x128xf32>, vector<128x256xf32>, vector<8x256xf32> -> vector<8x256xf32>
    %c0_9 = arith.constant 0 : index
    %c0_10 = arith.constant 0 : index
    %10 = vector.load %arg5[%c0_9, %c0_10] : memref<1x256xf32, #tpu.memory_space<vmem>>, vector<1x256xf32>
    %11 = vector.broadcast %10 : vector<1x256xf32> to vector<8x256xf32>
    %12 = arith.addf %9, %11 : vector<8x256xf32>
    %13 = vector.extract_strided_slice %12 {offsets = [0, 0], sizes = [8, 128], strides = [1, 1]} : vector<8x256xf32> to vector<8x128xf32>
    %14 = vector.extract_strided_slice %12 {offsets = [0, 128], sizes = [8, 128], strides = [1, 1]} : vector<8x256xf32> to vector<8x128xf32>
    %cst_11 = arith.constant 5.000000e-01 : f32
    %15 = vector.broadcast %cst_11 : f32 to vector<8x128xf32>
    %16 = arith.mulf %15, %14 : vector<8x128xf32>
    %17 = math.exp %16 : vector<8x128xf32>
    %18 = arith.mulf %17, %0 : vector<8x128xf32>
    %19 = arith.addf %13, %18 : vector<8x128xf32>
    %c0_12 = arith.constant 0 : index
    %c0_13 = arith.constant 0 : index
    %20 = vector.load %arg6[%c0_12, %c0_13] : memref<128x128xf32, #tpu.memory_space<vmem>>, vector<128x128xf32>
    %cst_14 = arith.constant dense<0.000000e+00> : vector<8x128xf32>
    %21 = tpu.matmul %19, %20, %cst_14 {dimension_numbers = #tpu.dot_dimension_numbers<[1], [0], [0], [1], [0, 0, 1, 1], [], []>} : vector<8x128xf32>, vector<128x128xf32>, vector<8x128xf32> -> vector<8x128xf32>
    %c0_15 = arith.constant 0 : index
    %c0_16 = arith.constant 0 : index
    %22 = vector.load %arg7[%c0_15, %c0_16] : memref<1x128xf32, #tpu.memory_space<vmem>>, vector<1x128xf32>
    %23 = vector.broadcast %22 : vector<1x128xf32> to vector<8x128xf32>
    %24 = arith.addf %21, %23 : vector<8x128xf32>
    %cst_17 = arith.constant 0.000000e+00 : f32
    %25 = vector.broadcast %cst_17 : f32 to vector<8x128xf32>
    %26 = arith.maximumf %24, %25 : vector<8x128xf32>
    %c0_18 = arith.constant 0 : index
    %c0_19 = arith.constant 0 : index
    %27 = vector.load %arg8[%c0_18, %c0_19] : memref<128x128xf32, #tpu.memory_space<vmem>>, vector<128x128xf32>
    %cst_20 = arith.constant dense<0.000000e+00> : vector<8x128xf32>
    %28 = tpu.matmul %26, %27, %cst_20 {dimension_numbers = #tpu.dot_dimension_numbers<[1], [0], [0], [1], [0, 0, 1, 1], [], []>} : vector<8x128xf32>, vector<128x128xf32>, vector<8x128xf32> -> vector<8x128xf32>
    %c0_21 = arith.constant 0 : index
    %c0_22 = arith.constant 0 : index
    %29 = vector.load %arg9[%c0_21, %c0_22] : memref<1x128xf32, #tpu.memory_space<vmem>>, vector<1x128xf32>
    %30 = vector.broadcast %29 : vector<1x128xf32> to vector<8x128xf32>
    %31 = arith.addf %28, %30 : vector<8x128xf32>
    %32 = arith.addf %31, %13 : vector<8x128xf32>
    %c0_23 = arith.constant 0 : index
    %c0_24 = arith.constant 0 : index
    %33 = vector.load %arg10[%c0_23, %c0_24] : memref<8x128xf32, #tpu.memory_space<vmem>>, vector<8x128xf32>
    tpu.vector_store %arg10[%c0_23, %c0_24], %32 {strides = array<i32>} : memref<8x128xf32, #tpu.memory_space<vmem>>, vector<8x128xf32>,
    return
  }
  func.func @transform_0(%arg0: i32) -> (i32, i32) {
    %c0_i32 = arith.constant 0 : i32
    %c0_i32_0 = arith.constant 0 : i32
    return %arg0, %c0_i32 : i32, i32
  }
  func.func @transform_1(%arg0: i32) -> (i32, i32) {
    %c0_i32 = arith.constant 0 : i32
    %c0_i32_0 = arith.constant 0 : i32
    %c0_i32_1 = arith.constant 0 : i32
    return %c0_i32, %c0_i32_0 : i32, i32
  }
  func.func @transform_2(%arg0: i32) -> (i32, i32) {
    %c0_i32 = arith.constant 0 : i32
    %c0_i32_0 = arith.constant 0 : i32
    %c0_i32_1 = arith.constant 0 : i32
    return %c0_i32, %c0_i32_0 : i32, i32
  }
  func.func @transform_3(%arg0: i32) -> (i32, i32) {
    %c0_i32 = arith.constant 0 : i32
    %c0_i32_0 = arith.constant 0 : i32
    %c0_i32_1 = arith.constant 0 : i32
    return %c0_i32, %c0_i32_0 : i32, i32
  }
  func.func @transform_4(%arg0: i32) -> (i32, i32) {
    %c0_i32 = arith.constant 0 : i32
    %c0_i32_0 = arith.constant 0 : i32
    %c0_i32_1 = arith.constant 0 : i32
    return %c0_i32, %c0_i32_0 : i32, i32
  }
  func.func @transform_5(%arg0: i32) -> (i32, i32) {
    %c0_i32 = arith.constant 0 : i32
    %c0_i32_0 = arith.constant 0 : i32
    %c0_i32_1 = arith.constant 0 : i32
    return %c0_i32, %c0_i32_0 : i32, i32
  }
  func.func @transform_6(%arg0: i32) -> (i32, i32) {
    %c0_i32 = arith.constant 0 : i32
    %c0_i32_0 = arith.constant 0 : i32
    %c0_i32_1 = arith.constant 0 : i32
    return %c0_i32, %c0_i32_0 : i32, i32
  }
  func.func @transform_7(%arg0: i32) -> (i32, i32) {
    %c0_i32 = arith.constant 0 : i32
    %c0_i32_0 = arith.constant 0 : i32
    %c0_i32_1 = arith.constant 0 : i32
    return %c0_i32, %c0_i32_0 : i32, i32
  }
  func.func @transform_8(%arg0: i32) -> (i32, i32) {
    %c0_i32 = arith.constant 0 : i32
    %c0_i32_0 = arith.constant 0 : i32
    %c0_i32_1 = arith.constant 0 : i32
    return %c0_i32, %c0_i32_0 : i32, i32
  }
  func.func @transform_9(%arg0: i32) -> (i32, i32) {
    %c0_i32 = arith.constant 0 : i32
    %c0_i32_0 = arith.constant 0 : i32
    return %arg0, %c0_i32 : i32, i32
  }
}

</mosaic_0001>

<bundles_post_ra>
// kernel: model_forward.1
= control target key start
LH: loop header
LB: loop body
LE: loop exit
PB: predicated region body
PF: predicated region fallthrough
CT: control target
= control target key end

     0   :  { %14 = vsyncpa [#allocation3], 0  ;;  %s1577_s0 = inlined_call_operand.vmem [shape: f32[16,128], index: 0, kind: input, shape index: {}]   ;;  %s1578_s1 = inlined_call_operand.vmem [shape: f32[128,128], index: 1, kind: input, shape index: {}]   ;;  %s1579_s2 = inlined_call_operand.vmem [shape: f32[1,128], index: 2, kind: input, shape index: {}]   ;;  %s1580_s3 = inlined_call_operand.hbm [shape: f32[128,256], index: 3, kind: input, shape index: {}]   ;;  %s1581_s4 = inlined_call_operand.vmem [shape: f32[1,256], index: 4, kind: input, shape index: {}]   ;;  %s1582_s5 = inlined_call_operand.hbm [shape: f32[128,128], index: 5, kind: input, shape index: {}]   ;;  %s1583_s6 = inlined_call_operand.vmem [shape: f32[1,128], index: 6, kind: input, shape index: {}]   ;;  %s1584_s7 = inlined_call_operand.hbm [shape: f32[128,128], index: 7, kind: input, shape index: {}]   ;;  %s1585_s8 = inlined_call_operand.vmem [shape: f32[1,128], index: 8, kind: input, shape index: {}]   ;;  %s1586_s9 = inlined_call_operand.vmem [shape: f32[16,128], index: 9, kind: output, shape index: {}]  }
   0x1   :  { %15 = vsyncpa [#allocation5], 0  ;;  %s1346_s30 = smov 0  }
   0x2 LB: > { %s1286_s10 = smov [#allocation4]   ;;  %s1352_s12 = sadd.s32 4294967295, %s1284_s30   ;;  %s1284_s30 = sphi %s1346_s30, %s21_s30  }
   0x3   : > { %s280_s11 = sshll.u32 %s1286_s10, 4  ;;  %p862_p0 = scmp.ge.s32.totalorder %s1284_s30, 1  ;;  %s1361_s11 = int_to_ptr.vmem [resolvable:$true] %s280_s11 }
   0x4   : > { %p246_p1 = scmp.lt.s32.totalorder %s1284_s30, 3  ;;  %p1587_p2 = scmp.eq.s32.totalorder %s1352_s12, 0 }
   0x5   : > { %s1287_s14 = smov [#allocation2]   ;;  %s1288_s17 = smov [#allocation6]  }
   0x6   : > { %p1357_p3 = pnand %p862_p0, %p246_p1  ;;  %s264_s15 = sshll.u32 %s1287_s14, 4  ;;  %s1365_s15 = int_to_ptr.vmem [resolvable:$true] %s264_s15 }
   0x7   : > { %s1373_s18 = sshll.u32 %s1288_s17, 4  ;;  %s1186_s21 = scalar_lea.hbm %s1582_s5, 2048  ;;  %s297_s18 = int_to_ptr.vmem [resolvable:$true] %s1373_s18 }
   0x8   : > { %s1589_s13 = scalar_select %p1357_p3, 1, 0 }
   0x9   : > { %p1150_p4 = pneg %p1357_p3  ;;  %p1187_p6 = scmp.ne.s32.totalorder %s1582_s5, %s1186_s21 }
   0xa   : > { %p1193_p10 = scmp.lt.u32.totalorder %s1186_s21, %s1582_s5 }
   0xb   : > { %p1369_p5 = pnand %p1587_p2, %p1150_p4 }
   0xd   : > { %p1383_p7 = pneg %p1369_p5 }
   0xf   : > { %p1189_p8 = pnand %p1383_p7, %p1187_p6 }
  0x11   : > { %p1190_p9 = pneg %p1189_p8 }
  0x13   : > { %p1195_p11 = pnand %p1193_p10, %p1190_p9 }
  0x15   : > { %1198 = shalt.err (!%p1195_p11)
}
  0x16   : > { %s1199_s27 = scalar_lea.vmem %s1361_s11, 2048  ;;  %p1207_p1 = scmp.lt.s32.totalorder %s1361_s11, %s1361_s11 }
  0x17   : > { %p1200_p12 = scmp.ne.s32.totalorder %s1361_s11, %s1199_s27  ;;  %p1208_p4 = scmp.lt.s32.totalorder %s1199_s27, %s1199_s27 }
  0x19   : > { %p1202_p13 = pnand %p1200_p12, %p1383_p7  ;;  %p1209_p6 = por %p1208_p4, %p1207_p1 }
  0x1b   : > { %p1203_p0 = pneg %p1202_p13 }
  0x1d   : > { %p1210_p8 = pnand %p1209_p6, %p1203_p0 }
  0x1f   : > { %1213 = shalt.err (!%p1210_p8)
}
  0x20   : > { %s1289_s28 = smov 128   ;;  %s1290_s29 = smov 8  }
  0x21   : > { %1156 = dma.hbm_to_vmem [thread:$0]  (!%p1369_p5), %s1582_s5, 2048, %s1361_s11, [#allocation5], %s1289_s28, %s1289_s28, %s1290_s29  }
  0x22   : > { %s1214_s20 = scalar_lea.hbm %s1580_s3, 4096 }
  0x23   : > { %p1215_p9 = scmp.ne.s32.totalorder %s1580_s3, %s1214_s20  ;;  %p1221_p12 = scmp.lt.u32.totalorder %s1214_s20, %s1580_s3 }
  0x25   : > { %p1217_p10 = pnand %p1215_p9, %p1383_p7 }
  0x27   : > { %p1218_p11 = pneg %p1217_p10 }
  0x29   : > { %p1223_p13 = pnand %p1221_p12, %p1218_p11 }
  0x2b   : > { %1226 = shalt.err (!%p1223_p13)
}
  0x2c   : > { %s1227_s11 = scalar_lea.vmem %s1365_s15, 4096  ;;  %p1235_p6 = scmp.lt.s32.totalorder %s1365_s15, %s1365_s15 }
  0x2d   : > { %p1228_p0 = scmp.ne.s32.totalorder %s1365_s15, %s1227_s11  ;;  %p1236_p8 = scmp.lt.s32.totalorder %s1227_s11, %s1227_s11 }
  0x2f   : > { %p1230_p1 = pnand %p1228_p0, %p1383_p7  ;;  %p1237_p9 = por %p1236_p8, %p1235_p6 }
  0x31   : > { %p1231_p4 = pneg %p1230_p1 }
  0x33   : > { %p1238_p10 = pnand %p1237_p9, %p1231_p4 }
  0x35   : > { %1241 = shalt.err (!%p1238_p10)
}
  0x36   : > { %s1291_s26 = smov 256   ;;  %s1292_s27 = smov 16  }
  0x37   : > { %1153 = dma.hbm_to_vmem [thread:$0]  (!%p1369_p5), %s1580_s3, 4096, %s1365_s15, [#allocation3], %s1291_s26, %s1291_s26, %s1292_s27  }
  0x38   : > { %s1242_s20 = scalar_lea.hbm %s1584_s7, 2048 }
  0x39   : > { %p1243_p11 = scmp.ne.s32.totalorder %s1584_s7, %s1242_s20  ;;  %p1249_p0 = scmp.lt.u32.totalorder %s1242_s20, %s1584_s7 }
  0x3b   : > { %p1245_p12 = pnand %p1243_p11, %p1383_p7 }
  0x3d   : > { %p1246_p13 = pneg %p1245_p12 }
  0x3f   : > { %p1251_p1 = pnand %p1249_p0, %p1246_p13 }
  0x41   : > { %1254 = shalt.err (!%p1251_p1)
}
  0x42   : > { %s1255_s11 = scalar_lea.vmem %s297_s18, 2048  ;;  %p1263_p9 = scmp.lt.s32.totalorder %s297_s18, %s297_s18 }
  0x43   : > { %p1256_p4 = scmp.ne.s32.totalorder %s297_s18, %s1255_s11  ;;  %p1264_p10 = scmp.lt.s32.totalorder %s1255_s11, %s1255_s11 }
  0x45   : > { %p1258_p6 = pnand %p1256_p4, %p1383_p7  ;;  %p1265_p2 = por %p1264_p10, %p1263_p9 }
  0x47   : > { %p1259_p8 = pneg %p1258_p6 }
  0x49   : > { %p1266_p3 = pnand %p1265_p2, %p1259_p8 }
  0x4b   : > { %1269 = shalt.err (!%p1266_p3)
}
  0x4c   : > { %1159 = dma.hbm_to_vmem [thread:$0]  (!%p1369_p5), %s1584_s7, 2048, %s297_s18, [#allocation5], %s1289_s28, %s1289_s28, %s1290_s29  }
  0x4d   : > { %p1592_p11 = scmp.ne.s32.totalorder %s1589_s13, 0 }
  0x4e   : > { %p1593_p7 = scmp.eq.s32.totalorder (!%p1592_p11), %s1352_s12, 0 }
  0x4f   : > { %322 = sbr.rel (%p1592_p11) target bundleno = 1007 (0x3ef), region = 56 }
  0x56   : > { %1275 = dma.done.wait (%p1593_p7), [#allocation3], 4096   ;;  %p1594_p12 = pmov %p1593_p7 }
  0x57   : > { %p1595_p2 = pmov %p1593_p7 }
  0x58   : > { %1277 = vsyncadd (%p1594_p12), [#allocation3], 4294963200 }
  0x59   : > { %1279 = dma.done.wait (%p1595_p2), [#allocation5], 4096   ;;  %p1596_p3 = pmov %p1595_p2 }
  0x5a   : > { %v1293_v0 = vmov 0.0|0.0   ;;  %vm1294_vm0 = vmmov 0   ;;  %v1295_v1 = vmov 0.0   ;;  %v373_v2 = vld [vmem:[%s1578_s1] sm:$0xff]  ;;  %v374_v3 = vld [vmem:[%s1578_s1 + $0x8] sm:$0xff]  ;;  %v375_v4 = vld [vmem:[%s1578_s1 + $0x10] sm:$0xff] }
  0x5b   : > { %1281 = vsyncadd (%p1596_p3), [#allocation5], 4294963200  ;;  %1034 = vmatprep.subr.bf16.mxu0 %v1293_v0  ;;  %961 = vmatprep.mubr.msk.f32.mxu0 %vm1294_vm0, %v1295_v1  ;;  %v1035_v5 = vpack.c.bf16 %v374_v3, %v373_v2  ;;  %v376_v6 = vld [vmem:[%s1578_s1 + $0x18] sm:$0xff]  ;;  %v377_v8 = vld [vmem:[%s1578_s1 + $0x20] sm:$0xff]  ;;  %p364_p5 = scmp.lt.s32.totalorder %s1352_s12, 1 }
  0x5c   : > { %575 = vmatprep.mubr.f32.mxu1 %v1295_v1  ;;  %v1038_v7 = vpack.c.bf16 %v376_v6, %v375_v4  ;;  %v378_v9 = vld [vmem:[%s1578_s1 + $0x28] sm:$0xff]  ;;  %v379_v11 = vld [vmem:[%s1578_s1 + $0x30] sm:$0xff]  ;;  %v380_v12 = vld [vmem:[%s1578_s1 + $0x38] sm:$0xff] }
  0x5d   : > { %1036 = vmatpush3.bf16.msra.mxu0 %v1035_v5  ;;  %v468_v10 = vld [vmem:[#allocation2 + $0x8] sm:$0xff]  ;;  %v470_v13 = vld [vmem:[#allocation2 + $0x18] sm:$0xff]  ;;  %v467_v14 = vld [vmem:[#allocation2] sm:$0xff]  ;;  %v1041_v16 = vpack.c.bf16 %v378_v9, %v377_v8  ;;  %v1044_v27 = vpack.c.bf16 %v380_v12, %v379_v11  ;;  %s1598_s12 = smov (!%p364_p5, %s1352_s12), 1 }
  0x5e   : > { %1037 = vmatprep.subr.bf16.mxu0 %v1293_v0  ;;  %v469_v15 = vld [vmem:[#allocation2 + $0x10] sm:$0xff]  ;;  %v1058_v17 = vpack.c.bf16 %v470_v13, %v468_v10  ;;  %v472_v19 = vld [vmem:[#allocation2 + $0x28] sm:$0xff]  ;;  %v474_v20 = vld [vmem:[#allocation2 + $0x38] sm:$0xff]  ;;  %s871_s22 = sshll.u32 %s1598_s12, 3 }
  0x5f   : > { %v1060_v18 = vpack.c.bf16 %v469_v15, %v467_v14  ;;  %v471_v21 = vld [vmem:[#allocation2 + $0x20] sm:$0xff]  ;;  %v1062_v22 = vpack.c.bf16 %v474_v20, %v472_v19  ;;  %v473_v23 = vld [vmem:[#allocation2 + $0x30] sm:$0xff]  ;;  %v476_v24 = vld [vmem:[#allocation2 + $0x48] sm:$0xff]  ;;  %s367_s11 = scalar_lea.vmem %s1577_s0, %s871_s22  ;;  %s371_s14 = scalar_lea.vmem %s1586_s9, %s871_s22 }
  0x60   : > { %v478_v25 = vld [vmem:[#allocation2 + $0x58] sm:$0xff]  ;;  %1059 = vmatprep.subr.bf16.mxu1 %v1058_v17  ;;  %v1064_v26 = vpack.c.bf16 %v473_v23, %v471_v21  ;;  %v381_v28 = vld [vmem:[%s1578_s1 + $0x40] sm:$0xff]  ;;  %v477_v31 = vld [vmem:[#allocation2 + $0x50] sm:$0xff] }
  0x61   : > { %1039 = vmatpush3.bf16.msra.mxu0 %v1038_v7  ;;  %1061 = vmatpush1.bf16.msra.mxu1 %v1060_v18  ;;  %v1066_v29 = vpack.c.bf16 %v478_v25, %v476_v24  ;;  %v475_v30 = vld [vmem:[#allocation2 + $0x40] sm:$0xff]  ;;  %v382_v32 = vld [vmem:[%s1578_s1 + $0x48] sm:$0xff]  ;;  %v482_v34 = vld [vmem:[#allocation2 + $0x78] sm:$0xff] }
  0x62   : > { %1040 = vmatprep.subr.bf16.mxu0 %v1293_v0  ;;  %1063 = vmatprep.subr.bf16.mxu1 %v1062_v22  ;;  %v480_v33 = vld [vmem:[#allocation2 + $0x68] sm:$0xff]  ;;  %v1068_v35 = vpack.c.bf16 %v477_v31, %v475_v30  ;;  %v1047_v36 = vpack.c.bf16 %v382_v32, %v381_v28  ;;  %v383_v37 = vld [vmem:[%s1578_s1 + $0x50] sm:$0xff]  ;;  %v479_v39 = vld [vmem:[#allocation2 + $0x60] sm:$0xff] }
  0x63   : > { %v1070_v38 = vpack.c.bf16 %v482_v34, %v480_v33  ;;  %v481_v40 = vld [vmem:[#allocation2 + $0x70] sm:$0xff]  ;;  %v384_v41 = vld [vmem:[%s1578_s1 + $0x58] sm:$0xff]  ;;  %v484_v42 = vld [vmem:[#allocation2 + $0x88] sm:$0xff] }
  0x64   : > { %v486_v43 = vld [vmem:[#allocation2 + $0x98] sm:$0xff]  ;;  %v1072_v44 = vpack.c.bf16 %v481_v40, %v479_v39  ;;  %v1050_v45 = vpack.c.bf16 %v384_v41, %v383_v37  ;;  %v385_v46 = vld [vmem:[%s1578_s1 + $0x60] sm:$0xff]  ;;  %v485_v49 = vld [vmem:[#allocation2 + $0x90] sm:$0xff] }
  0x65   : > { %1042 = vmatpush3.bf16.msra.mxu0 %v1041_v16  ;;  %1065 = vmatpush1.bf16.msra.mxu1 %v1064_v26  ;;  %v1074_v47 = vpack.c.bf16 %v486_v43, %v484_v42  ;;  %v483_v48 = vld [vmem:[#allocation2 + $0x80] sm:$0xff]  ;;  %v386_v50 = vld [vmem:[%s1578_s1 + $0x68] sm:$0xff]  ;;  %v490_v52 = vld [vmem:[#allocation2 + $0xb8] sm:$0xff] }
  0x66   : > { %1043 = vmatprep.subr.bf16.mxu0 %v1293_v0  ;;  %1067 = vmatprep.subr.bf16.mxu1 %v1066_v29  ;;  %v488_v51 = vld [vmem:[#allocation2 + $0xa8] sm:$0xff]  ;;  %v1076_v53 = vpack.c.bf16 %v485_v49, %v483_v48  ;;  %v1053_v54 = vpack.c.bf16 %v386_v50, %v385_v46  ;;  %v387_v55 = vld [vmem:[%s1578_s1 + $0x70] sm:$0xff]  ;;  %v487_v57 = vld [vmem:[#allocation2 + $0xa0] sm:$0xff] }
  0x67   : > { %v1078_v56 = vpack.c.bf16 %v490_v52, %v488_v51  ;;  %v489_v58 = vld [vmem:[#allocation2 + $0xb0] sm:$0xff]  ;;  %v388_v59 = vld [vmem:[%s1578_s1 + $0x78] sm:$0xff]  ;;  %v492_v60 = vld [vmem:[#allocation2 + $0xc8] sm:$0xff] }
  0x68   : > { %v494_v61 = vld [vmem:[#allocation2 + $0xd8] sm:$0xff]  ;;  %v1080_v62 = vpack.c.bf16 %v489_v58, %v487_v57  ;;  %v1056_v63 = vpack.c.bf16 %v388_v59, %v387_v55  ;;  %v491_v3 = vld [vmem:[#allocation2 + $0xc0] sm:$0xff]  ;;  %v493_v4 = vld [vmem:[#allocation2 + $0xd0] sm:$0xff] }
  0x69   : > { %1045 = vmatpush3.bf16.msra.mxu0 %v1044_v27  ;;  %1069 = vmatpush1.bf16.msra.mxu1 %v1068_v35  ;;  %v1082_v2 = vpack.c.bf16 %v494_v61, %v492_v60  ;;  %v1084_v5 = vpack.c.bf16 %v493_v4, %v491_v3  ;;  %v1533_v6 = vld [vmem:[%s367_s11] sm:$0xff]  ;;  %v496_v7 = vld [vmem:[#allocation2 + $0xe8] sm:$0xff]  ;;  %v498_v8 = vld [vmem:[#allocation2 + $0xf8] sm:$0xff] }
  0x6a   : > { %1046 = vmatprep.subr.bf16.mxu0 %v1293_v0  ;;  %1071 = vmatprep.subr.bf16.mxu1 %v1070_v38  ;;  %v1086_v9 = vpack.c.bf16 %v498_v8, %v496_v7  ;;  %v495_v10 = vld [vmem:[#allocation2 + $0xe0] sm:$0xff]  ;;  %v497_v11 = vld [vmem:[#allocation2 + $0xf0] sm:$0xff]  ;;  %v588_v14 = vld [vmem:[#allocation4 + $0x8] sm:$0xff] }
  0x6b   : > { %v1088_v12 = vpack.c.bf16 %v497_v11, %v495_v10  ;;  %v587_v13 = vld [vmem:[#allocation4] sm:$0xff]  ;;  %v589_v15 = vld [vmem:[#allocation4 + $0x10] sm:$0xff]  ;;  %v590_v17 = vld [vmem:[#allocation4 + $0x18] sm:$0xff] }
  0x6c   : > { %v1091_v16 = vpack.c.bf16 %v588_v14, %v587_v13  ;;  %v1094_v18 = vpack.c.bf16 %v590_v17, %v589_v15  ;;  %v873_v19 = vld [vmem:[%s1579_s2] ss:$0 sm:$0xff]  ;;  %v592_v25 = vld [vmem:[#allocation4 + $0x28] sm:$0xff]  ;;  %v593_v27 = vld [vmem:[#allocation4 + $0x30] sm:$0xff] }
  0x6d   : > { %1048 = vmatpush3.bf16.msra.mxu0 %v1047_v36  ;;  %1073 = vmatpush1.bf16.msra.mxu1 %v1072_v44  ;;  %v591_v24 = vld [vmem:[#allocation4 + $0x20] sm:$0xff]  ;;  %v594_v28 = vld [vmem:[#allocation4 + $0x38] sm:$0xff]  ;;  %v596_v31 = vld [vmem:[#allocation4 + $0x48] sm:$0xff] }
  0x6e   : > { %1049 = vmatprep.subr.bf16.mxu0 %v1293_v0  ;;  %1075 = vmatprep.subr.bf16.mxu1 %v1074_v47  ;;  %v1097_v26 = vpack.c.bf16 %v592_v25, %v591_v24  ;;  %v1100_v29 = vpack.c.bf16 %v594_v28, %v593_v27  ;;  %v595_v30 = vld [vmem:[#allocation4 + $0x40] sm:$0xff]  ;;  %v597_v33 = vld [vmem:[#allocation4 + $0x50] sm:$0xff]  ;;  %v598_v34 = vld [vmem:[#allocation4 + $0x58] sm:$0xff] }
  0x6f   : > { %v1103_v32 = vpack.c.bf16 %v596_v31, %v595_v30  ;;  %v599_v35 = vld [vmem:[#allocation4 + $0x60] sm:$0xff]  ;;  %v600_v36 = vld [vmem:[#allocation4 + $0x68] sm:$0xff]  ;;  %v601_v38 = vld [vmem:[#allocation4 + $0x70] sm:$0xff] }
  0x70   : > { %v1109_v37 = vpack.c.bf16 %v600_v36, %v599_v35  ;;  %v602_v39 = vld [vmem:[#allocation4 + $0x78] sm:$0xff]  ;;  %v681_v41 = vld [vmem:[#allocation6] sm:$0xff]  ;;  %v682_v42 = vld [vmem:[#allocation6 + $0x8] sm:$0xff] }
  0x71   : > { %1051 = vmatpush3.bf16.msra.mxu0 %v1050_v45  ;;  %1077 = vmatpush1.bf16.msra.mxu1 %v1076_v53  ;;  %v1112_v40 = vpack.c.bf16 %v602_v39, %v601_v38  ;;  %v683_v43 = vld [vmem:[#allocation6 + $0x10] sm:$0xff]  ;;  %v1115_v44 = vpack.c.bf16 %v682_v42, %v681_v41  ;;  %v684_v45 = vld [vmem:[#allocation6 + $0x18] sm:$0xff]  ;;  %v685_v47 = vld [vmem:[#allocation6 + $0x20] sm:$0xff] }
  0x72   : > { %1052 = vmatprep.subr.bf16.mxu0 %v1293_v0  ;;  %1079 = vmatprep.subr.bf16.mxu1 %v1078_v56  ;;  %v1118_v46 = vpack.c.bf16 %v684_v45, %v683_v43  ;;  %v686_v48 = vld [vmem:[#allocation6 + $0x28] sm:$0xff]  ;;  %v687_v50 = vld [vmem:[#allocation6 + $0x30] sm:$0xff]  ;;  %v688_v51 = vld [vmem:[#allocation6 + $0x38] sm:$0xff] }
  0x73   : > { %v1121_v49 = vpack.c.bf16 %v686_v48, %v685_v47  ;;  %v1124_v52 = vpack.c.bf16 %v688_v51, %v687_v50  ;;  %v689_v53 = vld [vmem:[#allocation6 + $0x40] sm:$0xff]  ;;  %v691_v56 = vld [vmem:[#allocation6 + $0x50] sm:$0xff]  ;;  %v692_v57 = vld [vmem:[#allocation6 + $0x58] sm:$0xff] }
  0x74   : > { %v1130_v58 = vpack.c.bf16 %v692_v57, %v691_v56  ;;  %v693_v59 = vld [vmem:[#allocation6 + $0x60] sm:$0xff]  ;;  %v694_v60 = vld [vmem:[#allocation6 + $0x68] sm:$0xff]  ;;  %v696_v17 = vld [vmem:[#allocation6 + $0x78] sm:$0xff] }
  0x75   : > { %1054 = vmatpush3.bf16.msra.mxu0 %v1053_v54  ;;  %1081 = vmatpush1.bf16.msra.mxu1 %v1080_v62  ;;  %v690_v54 = vld [vmem:[#allocation6 + $0x48] sm:$0xff]  ;;  %v1133_v61 = vpack.c.bf16 %v694_v60, %v693_v59  ;;  %v501_v62 = vlaneseq  ;;  %v499_v3 = vld [vmem:[%s1581_s4] sm:$0x3] }
  0x76   : > { %1055 = vmatprep.subr.bf16.mxu0 %v1293_v0  ;;  %1083 = vmatprep.subr.bf16.mxu1 %v1082_v2  ;;  %v1127_v55 = vpack.c.bf16 %v690_v54, %v689_v53 }
  0x79   : > { %1057 = vmatpush3.bf16.msra.mxu0 %v1056_v63  ;;  %1085 = vmatpush1.bf16.msra.mxu1 %v1084_v5  ;;  %v502_v63 = vshrl.u32 %v501_v62, 7 }
  0x7a   : > { %1090 = vmatprep.subr.bf16.mxu0 %v1293_v0  ;;  %1087 = vmatprep.subr.bf16.mxu1 %v1086_v9 }
  0x7b   : > { %v507_v2 = vsub.s32 1, %v502_v63  ;;  %v503_v11 = vsub.s32 0, %v502_v63 }
  0x7c   : > { %962 = vmatmul.mubr.f32.vlgmr.msra.gmra.mrb[0].mxu0 %v1533_v6 }
  0x7d   : > { %996 = vmatprep.mubr.msk.f32.mxu0 %vm1294_vm0, %v1295_v1  ;;  %1089 = vmatpush1.bf16.msra.mxu1 %v1088_v12  ;;  %v508_v4 = vrot.slane %v499_v3, %v507_v2  ;;  %v504_v12 = vrot.slane %v499_v3, %v503_v11 }
  0x7e   : > { %1114 = vmatprep.subr.bf16.mxu1 %v1293_v0  ;;  %1092 = vmatpush3.bf16.msra.mxu0 %v1091_v16  ;;  %v695_v16 = vld [vmem:[#allocation6 + $0x70] sm:$0xff] }
  0x7f   : > { %1093 = vmatprep.subr.bf16.mxu0 %v1293_v0 }
  0x82   : > { %1095 = vmatpush3.bf16.msra.mxu0 %v1094_v18  ;;  %v1136_v18 = vpack.c.bf16 %v696_v17, %v695_v16 }
  0x83   : > { %1096 = vmatprep.subr.bf16.mxu0 %v1293_v0 }
  0x86   : > { %1098 = vmatpush3.bf16.msra.mxu0 %v1097_v26 }
  0x87   : > { %1099 = vmatprep.subr.bf16.mxu0 %v1293_v0 }
  0x8a   : > { %1101 = vmatpush3.bf16.msra.mxu0 %v1100_v29 }
  0x8b   : > { %1102 = vmatprep.subr.bf16.mxu0 %v1293_v0 }
  0x8e   : > { %1104 = vmatpush3.bf16.msra.mxu0 %v1103_v32 }
  0x8f   : > { %1105 = vmatprep.subr.bf16.mxu0 %v1293_v0 }
 0x14f   : > { %v462_v20 = vpop.f32.mrb[0].mxu0 }
 0x150   : > { %v463_v21 = vadd.f32 %v873_v19, %v462_v20  ;;  %v963_v22 = vpop.f32.mrb[1].mxu0  ;;  %v874_v19 = vld [vmem:[%s1583_s6] ss:$0 sm:$0xff] }
 0x152   : > { %v466_v23 = vmax.f32 %v463_v21, 0.0 }
 0x154   : > { %576 = vmatmul.mubr.f32.vlgmr.msra.gmra.mrb[0].mxu1 %v466_v23 }
 0x155   : > { %1031 = vmatprep.mubr.msk.f32.mxu1 %vm1294_vm0, %v1295_v1  ;;  %v1106_v1 = vpack.c.bf16 %v598_v34, %v597_v33  ;;  %1116 = vmatpush3.bf16.msra.mxu1 %v1115_v44 }
 0x156   : > { %1117 = vmatprep.subr.bf16.mxu1 %v1293_v0 }
 0x157   : > { %1107 = vmatpush3.bf16.msra.mxu0 %v1106_v1 }
 0x158   : > { %1108 = vmatprep.subr.bf16.mxu0 %v1293_v0 }
 0x159   : > { %1119 = vmatpush3.bf16.msra.mxu1 %v1118_v46 }
 0x15a   : > { %1120 = vmatprep.subr.bf16.mxu1 %v1293_v0 }
 0x15b   : > { %1110 = vmatpush3.bf16.msra.mxu0 %v1109_v37 }
 0x15c   : > { %1111 = vmatprep.subr.bf16.mxu0 %v1293_v0 }
 0x15d   : > { %1122 = vmatpush3.bf16.msra.mxu1 %v1121_v49 }
 0x15e   : > { %1123 = vmatprep.subr.bf16.mxu1 %v1293_v0 }
 0x15f   : > { %1113 = vmatpush3.bf16.msra.mxu0 %v1112_v40 }
 0x161   : > { %1125 = vmatpush3.bf16.msra.mxu1 %v1124_v52 }
 0x162   : > { %1126 = vmatprep.subr.bf16.mxu1 %v1293_v0 }
 0x165   : > { %1128 = vmatpush3.bf16.msra.mxu1 %v1127_v55 }
 0x166   : > { %1129 = vmatprep.subr.bf16.mxu1 %v1293_v0 }
 0x169   : > { %1131 = vmatpush3.bf16.msra.mxu1 %v1130_v58 }
 0x16a   : > { %1132 = vmatprep.subr.bf16.mxu1 %v1293_v0 }
 0x16d   : > { %1134 = vmatpush3.bf16.msra.mxu1 %v1133_v61 }
 0x16e   : > { %1135 = vmatprep.subr.bf16.mxu1 %v1293_v0 }
 0x171   : > { %1137 = vmatpush3.bf16.msra.mxu1 %v1136_v18 }
 0x227   : > { %v577_v5 = vpop.f32.mrb[0].mxu1 }
 0x228   : > { %v579_v7 = vpop.f32.mrb[1].mxu1  ;;  %v578_v14 = vadd.f32 %v577_v5, %v504_v12 }
 0x229   : > { %v580_v8 = vadd.f32 %v579_v7, %v508_v4 }
 0x22b   : > { %v582_v9 = vmul.f32 0.5, %v580_v8 }
 0x22d   : > { %v583_v10 = vmul.f32 1.442695, %v582_v9 }
 0x22f   : > { %1184 = vpow2.f32 %v583_v10 }
 0x239   : > { %v1185_v13 = vpop.eup %1184 }
 0x23a   : > { %v585_v0 = vmul.f32 %v1185_v13, %v1533_v6  ;;  %v875_v6 = vld [vmem:[%s1585_s8] ss:$0 sm:$0xff] }
 0x23c   : > { %v586_v15 = vadd.f32 %v585_v0, %v578_v14 }
 0x23e   : > { %997 = vmatmul.mubr.f32.vlgmr.msra.gmra.mrb[2].mxu0 %v586_v15 }
 0x311   : > { %v676_v20 = vpop.f32.mrb[2].mxu0 }
 0x312   : > { %v677_v21 = vadd.f32 %v874_v19, %v676_v20  ;;  %v998_v22 = vpop.f32.mrb[3].mxu0 }
 0x314   : > { %v680_v23 = vmax.f32 %v677_v21, 0.0 }
 0x316   : > { %1032 = vmatmul.mubr.f32.vlgmr.msra.gmra.mrb[2].mxu1 %v680_v23 }
 0x3e9   : > { %v770_v24 = vpop.f32.mrb[2].mxu1 }
 0x3ea   : > { %v771_v25 = vadd.f32 %v875_v6, %v770_v24  ;;  %v1033_v26 = vpop.f32.mrb[3].mxu1 }
 0x3ec   : > { %v774_v27 = vadd.f32 %v771_v25, %v578_v14 }
 0x3ee   : > { %775 = vst [vmem:[%s371_s14] sm:$0xff] %v774_v27 }
 0x3ef PF: > { %s21_s30 = sadd.s32 1, %s1284_s30  }
 0x3f0   : > { %p18_p13 = scmp.ge.s32.totalorder %s21_s30, 4  }
 0x3f2   :  { %20 = sbr.rel (!%p18_p13) target bundleno = 2 (0x2), region = 99 }
 0x3f9   :  { %795 = vsyncpa [#allocation3], 1 }
 0x3fa   :  { %797 = vsyncpa [#allocation3 + $0x1], 1 }
 0x3fb   :  { %798 = vsyncpa [#allocation5], 1 }

</bundles_post_ra>
